<compile_context>
chip_gen: v5e
topology: v5e:2x2
jax: 0.10.0
libtpu: 0.0.40
codegen_flags: <defaults>
</compile_context>

<pallas_src>
import jax
import jax.numpy as jnp
from jax.experimental import pallas as pl
from jax.experimental.pallas import tpu as pltpu


def ffm_kernel(x_ref, w1_ref, w2t_ref, b2_ref, w3_ref, b3_ref, o_ref):
    # x_ref  : (BB, K, HW)   per-element [context; spatial; ones] slabs
    # w1_ref : (F, K)        first 1x1 conv weight with bias folded in (last col)
    # w2t_ref: (F, F4)       squeeze conv weight, transposed
    # b2_ref : (1, F4)       squeeze bias (row)
    # w3_ref : (F, F4)       excite conv weight
    # b3_ref : (F, 1)        excite bias (column)
    # o_ref  : (BB, F, HW)
    bb = x_ref.shape[0]
    inv_hw = 1.0 / x_ref.shape[-1]

    for b in range(bb):  # BB is 1 or 2: fully unrolled, tiny
        # --- concat + 1x1 conv + bias fused into ONE MXU matmul, ReLU on VPU ---
        feats = jnp.dot(w1_ref[...], x_ref[b],
                        preferred_element_type=jnp.float32)          # (F, HW)
        feats = jnp.maximum(feats, 0.0)

        # --- SE attention branch, entirely off the MXU ---
        # AdaptiveAvgPool2d((1,1)) == mean over HW (XLU lane reduce)
        pooled = jnp.sum(feats, axis=-1, keepdims=True) * inv_hw      # (F, 1)
        # squeeze: (F,1) column broadcast along lanes * (F,F4), sublane reduce
        a = jnp.sum(w2t_ref[...] * pooled, axis=0, keepdims=True) + b2_ref[...]  # (1, F4)
        a = jnp.maximum(a, 0.0)
        # excite: (1,F4) row broadcast along sublanes * (F,F4), lane reduce
        a = jnp.sum(w3_ref[...] * a, axis=-1, keepdims=True) + b3_ref[...]        # (F, 1)
        attn = pl.reciprocal(1.0 + jnp.exp(-a))                       # sigmoid (F, 1)

        # --- features * attn + features == features * (1 + attn) ---
        o_ref[b] = feats * (1.0 + attn)


def feature_fusion_forward(context, spatial, params):
    """context: (N, C1, H, W), spatial: (N, C2, H, W) float32.
    Returns (N, F, H, W) matching the PyTorch module."""
    w1, b1, w2, b2, w3, b3 = params
    N, C1, H, W = context.shape
    _, C2, _, _ = spatial.shape
    F = w1.shape[0]
    F4 = w2.shape[0]
    HW = H * W
    K = C1 + C2 + 1  # channels of both inputs + ones row for the folded bias

    # Free reshapes (no transpose); the ~KiB-scale concat is done once by XLA.
    ctx = context.reshape(N, C1, HW)
    sp = spatial.reshape(N, C2, HW)
    ones = jnp.ones((N, 1, HW), dtype=context.dtype)
    x = jnp.concatenate([ctx, sp, ones], axis=1)                  # (N, K, HW)

    # Fold the first conv's bias into its weight; pre-transpose the squeeze weight.
    w1_aug = jnp.concatenate([w1, b1.reshape(F, 1)], axis=1)      # (F, K)
    w2t = w2.T                                                    # (F, F4)
    b2r = b2.reshape(1, F4)
    b3c = b3.reshape(F, 1)

    # One grid step per TensorCore: 2 "parallel" steps on dual-TC chips (v7x),
    # a single whole-batch step on single-TC chips (v5e/v6e) to kill per-step
    # overhead.  Per-block VMEM footprint is tens of KiB on every generation.
    try:
        kind = jax.devices()[0].device_kind.lower()
    except Exception:
        kind = ""
    dual_tc = "v7" in kind
    n_blocks = 2 if (dual_tc and N >= 2) else 1
    bb = pl.cdiv(N, n_blocks)
    n_blocks = pl.cdiv(N, bb)

    out = pl.pallas_call(
        ffm_kernel,
        out_shape=jax.ShapeDtypeStruct((N, F, HW), jnp.float32),
        grid_spec=pltpu.PrefetchScalarGridSpec(
            num_scalar_prefetch=0,
            grid=(n_blocks,),
            in_specs=[
                pl.BlockSpec((bb, K, HW), lambda i: (i, 0, 0)),
                # constant (0,0) index maps -> weights stay resident, no re-copy
                pl.BlockSpec((F, K), lambda i: (0, 0)),
                pl.BlockSpec((F, F4), lambda i: (0, 0)),
                pl.BlockSpec((1, F4), lambda i: (0, 0)),
                pl.BlockSpec((F, F4), lambda i: (0, 0)),
                pl.BlockSpec((F, 1), lambda i: (0, 0)),
            ],
            out_specs=pl.BlockSpec((bb, F, HW), lambda i: (i, 0, 0)),
        ),
        compiler_params=pltpu.CompilerParams(
            dimension_semantics=("parallel",)),   # batch blocks -> both TCs on v7x
    )(x, w1_aug, w2t, b2r, w3, b3c)

    # Lane-dense (N, F, HW) result; a reshape (not a transpose) restores NCHW.
    return out.reshape(N, F, H, W)


def feature_fusion_reference(context, spatial, params):
    """Pure-JAX reference mirroring the PyTorch forward."""
    w1, b1, w2, b2, w3, b3 = params
    x = jnp.concatenate([context, spatial], axis=1)                  # (N, C, H, W)
    feats = jnp.einsum('nchw,fc->nfhw', x, w1) + b1[None, :, None, None]
    feats = jnp.maximum(feats, 0.0)
    pooled = jnp.mean(feats, axis=(2, 3))                            # (N, F)
    a = pooled @ w2.T + b2
    a = jnp.maximum(a, 0.0)
    a = a @ w3.T + b3
    attn = jax.nn.sigmoid(a)                                         # (N, F)
    return feats * attn[:, :, None, None] + feats


if __name__ == "__main__":
    # FeatureFusionModule(in_channels=4, filters=32, act='relu')
    # context/spatial each contribute 2 channels -> concat channels = 4.
    N, C1, C2, H, W = 2, 2, 2, 16, 16
    FILTERS = 32
    F4 = FILTERS // 4

    key = jax.random.PRNGKey(0)
    k_c, k_s, k_w1, k_b1, k_w2, k_b2, k_w3, k_b3 = jax.random.split(key, 8)

    context = jax.random.normal(k_c, (N, C1, H, W), dtype=jnp.float32)
    spatial = jax.random.normal(k_s, (N, C2, H, W), dtype=jnp.float32)

    # Synthetic parameters with the module's shapes (1x1 convs stored as (out, in)).
    w1 = jax.random.normal(k_w1, (FILTERS, C1 + C2), dtype=jnp.float32) * 0.2
    b1 = jax.random.normal(k_b1, (FILTERS,), dtype=jnp.float32) * 0.1
    w2 = jax.random.normal(k_w2, (F4, FILTERS), dtype=jnp.float32) * 0.2
    b2 = jax.random.normal(k_b2, (F4,), dtype=jnp.float32) * 0.1
    w3 = jax.random.normal(k_w3, (FILTERS, F4), dtype=jnp.float32) * 0.2
    b3 = jax.random.normal(k_b3, (FILTERS,), dtype=jnp.float32) * 0.1

    params = (w1, b1, w2, b2, w3, b3)

    out = feature_fusion_forward(context, spatial, params)
    out = jax.block_until_ready(out)

    ref = feature_fusion_reference(context, spatial, params)
    assert out.shape == (N, FILTERS, H, W), out.shape
    assert jnp.allclose(out, ref, atol=1e-4, rtol=1e-4), "mismatch vs reference"

    print("KERNEL_OK")
</pallas_src>

<mosaic_0001>
module attributes {stable_mosaic.version = 11 : i64} {
  func.func @ffm_kernel(%arg0: i32, %arg1: memref<2x5x256xf32, #tpu.memory_space<vmem>>, %arg2: memref<32x5xf32, #tpu.memory_space<vmem>>, %arg3: memref<32x8xf32, #tpu.memory_space<vmem>>, %arg4: memref<1x8xf32, #tpu.memory_space<vmem>>, %arg5: memref<32x8xf32, #tpu.memory_space<vmem>>, %arg6: memref<32x1xf32, #tpu.memory_space<vmem>>, %arg7: memref<2x32x256xf32, #tpu.memory_space<vmem>>) attributes {dimension_semantics = [#tpu.dimension_semantics<parallel>], iteration_bounds = array<i64: 1>, scalar_prefetch = 0 : i64, scratch_operands = 0 : i64, tpu.core_type = #tpu.core_type<tc>, window_params = [{transform_indices = @transform_0, window_bounds = array<i64: 2, 5, 256>}, {pipeline_mode = #tpu.pipeline_mode<synchronous>, transform_indices = @transform_1, window_bounds = array<i64: 32, 5>}, {pipeline_mode = #tpu.pipeline_mode<synchronous>, transform_indices = @transform_2, window_bounds = array<i64: 32, 8>}, {pipeline_mode = #tpu.pipeline_mode<synchronous>, transform_indices = @transform_3, window_bounds = array<i64: 1, 8>}, {pipeline_mode = #tpu.pipeline_mode<synchronous>, transform_indices = @transform_4, window_bounds = array<i64: 32, 8>}, {pipeline_mode = #tpu.pipeline_mode<synchronous>, transform_indices = @transform_5, window_bounds = array<i64: 32, 1>}, {transform_indices = @transform_6, window_bounds = array<i64: 2, 32, 256>}]} {
    %c0 = arith.constant 0 : index
    %c0_0 = arith.constant 0 : index
    %0 = vector.load %arg2[%c0, %c0_0] : memref<32x5xf32, #tpu.memory_space<vmem>>, vector<32x5xf32>
    %c0_1 = arith.constant 0 : index
    %c0_2 = arith.constant 0 : index
    %c0_3 = arith.constant 0 : index
    %1 = vector.load %arg1[%c0_1, %c0_2, %c0_3] : memref<2x5x256xf32, #tpu.memory_space<vmem>>, vector<1x5x256xf32>
    %2 = vector.shape_cast %1 : vector<1x5x256xf32> to vector<5x256xf32>
    %cst = arith.constant dense<0.000000e+00> : vector<32x256xf32>
    %3 = tpu.matmul %0, %2, %cst {dimension_numbers = #tpu.dot_dimension_numbers<[1], [0], [0], [1], [0, 0, 1, 1], [], []>} : vector<32x5xf32>, vector<5x256xf32>, vector<32x256xf32> -> vector<32x256xf32>
    %cst_4 = arith.constant 0.000000e+00 : f32
    %4 = vector.broadcast %cst_4 : f32 to vector<32x256xf32>
    %5 = arith.maximumf %3, %4 : vector<32x256xf32>
    %cst_5 = arith.constant dense<0.000000e+00> : vector<32xf32>
    %6 = vector.multi_reduction <add>, %5, %cst_5 [1] : vector<32x256xf32> to vector<32xf32>
    %7 = vector.shape_cast %6 : vector<32xf32> to vector<32x1xf32>
    %cst_6 = arith.constant 3.906250e-03 : f32
    %8 = vector.broadcast %cst_6 : f32 to vector<32x1xf32>
    %9 = arith.mulf %7, %8 : vector<32x1xf32>
    %c0_7 = arith.constant 0 : index
    %c0_8 = arith.constant 0 : index
    %10 = vector.load %arg3[%c0_7, %c0_8] : memref<32x8xf32, #tpu.memory_space<vmem>>, vector<32x8xf32>
    %11 = vector.broadcast %9 : vector<32x1xf32> to vector<32x8xf32>
    %12 = arith.mulf %10, %11 : vector<32x8xf32>
    %cst_9 = arith.constant dense<0.000000e+00> : vector<8xf32>
    %13 = vector.multi_reduction <add>, %12, %cst_9 [0] : vector<32x8xf32> to vector<8xf32>
    %14 = vector.shape_cast %13 : vector<8xf32> to vector<1x8xf32>
    %c0_10 = arith.constant 0 : index
    %c0_11 = arith.constant 0 : index
    %15 = vector.load %arg4[%c0_10, %c0_11] : memref<1x8xf32, #tpu.memory_space<vmem>>, vector<1x8xf32>
    %16 = arith.addf %14, %15 : vector<1x8xf32>
    %cst_12 = arith.constant 0.000000e+00 : f32
    %17 = vector.broadcast %cst_12 : f32 to vector<1x8xf32>
    %18 = arith.maximumf %16, %17 : vector<1x8xf32>
    %c0_13 = arith.constant 0 : index
    %c0_14 = arith.constant 0 : index
    %19 = vector.load %arg5[%c0_13, %c0_14] : memref<32x8xf32, #tpu.memory_space<vmem>>, vector<32x8xf32>
    %20 = vector.broadcast %18 : vector<1x8xf32> to vector<32x8xf32>
    %21 = arith.mulf %19, %20 : vector<32x8xf32>
    %cst_15 = arith.constant dense<0.000000e+00> : vector<32xf32>
    %22 = vector.multi_reduction <add>, %21, %cst_15 [1] : vector<32x8xf32> to vector<32xf32>
    %23 = vector.shape_cast %22 : vector<32xf32> to vector<32x1xf32>
    %c0_16 = arith.constant 0 : index
    %c0_17 = arith.constant 0 : index
    %24 = vector.load %arg6[%c0_16, %c0_17] : memref<32x1xf32, #tpu.memory_space<vmem>>, vector<32x1xf32>
    %25 = arith.addf %23, %24 : vector<32x1xf32>
    %cst_18 = arith.constant 0.000000e+00 : f32
    %26 = vector.broadcast %cst_18 : f32 to vector<32x1xf32>
    %27 = arith.subf %26, %25 : vector<32x1xf32>
    %28 = math.exp %27 : vector<32x1xf32>
    %cst_19 = arith.constant 1.000000e+00 : f32
    %29 = vector.broadcast %cst_19 : f32 to vector<32x1xf32>
    %30 = arith.addf %29, %28 : vector<32x1xf32>
    %31 = tpu.reciprocal %30 : vector<32x1xf32> -> vector<32x1xf32>
    %cst_20 = arith.constant 1.000000e+00 : f32
    %32 = vector.broadcast %cst_20 : f32 to vector<32x1xf32>
    %33 = arith.addf %32, %31 : vector<32x1xf32>
    %34 = vector.broadcast %33 : vector<32x1xf32> to vector<32x256xf32>
    %35 = arith.mulf %5, %34 : vector<32x256xf32>
    %c0_21 = arith.constant 0 : index
    %c0_22 = arith.constant 0 : index
    %c0_23 = arith.constant 0 : index
    %36 = vector.load %arg7[%c0_21, %c0_22, %c0_23] : memref<2x32x256xf32, #tpu.memory_space<vmem>>, vector<1x32x256xf32>
    %37 = vector.shape_cast %36 : vector<1x32x256xf32> to vector<32x256xf32>
    %38 = vector.shape_cast %35 : vector<32x256xf32> to vector<1x32x256xf32>
    tpu.vector_store %arg7[%c0_21, %c0_22, %c0_23], %38 {strides = array<i32>} : memref<2x32x256xf32, #tpu.memory_space<vmem>>, vector<1x32x256xf32>,
    %c0_24 = arith.constant 0 : index
    %c0_25 = arith.constant 0 : index
    %39 = vector.load %arg2[%c0_24, %c0_25] : memref<32x5xf32, #tpu.memory_space<vmem>>, vector<32x5xf32>
    %c1 = arith.constant 1 : index
    %c0_26 = arith.constant 0 : index
    %c0_27 = arith.constant 0 : index
    %40 = vector.load %arg1[%c1, %c0_26, %c0_27] : memref<2x5x256xf32, #tpu.memory_space<vmem>>, vector<1x5x256xf32>
    %41 = vector.shape_cast %40 : vector<1x5x256xf32> to vector<5x256xf32>
    %cst_28 = arith.constant dense<0.000000e+00> : vector<32x256xf32>
    %42 = tpu.matmul %39, %41, %cst_28 {dimension_numbers = #tpu.dot_dimension_numbers<[1], [0], [0], [1], [0, 0, 1, 1], [], []>} : vector<32x5xf32>, vector<5x256xf32>, vector<32x256xf32> -> vector<32x256xf32>
    %cst_29 = arith.constant 0.000000e+00 : f32
    %43 = vector.broadcast %cst_29 : f32 to vector<32x256xf32>
    %44 = arith.maximumf %42, %43 : vector<32x256xf32>
    %cst_30 = arith.constant dense<0.000000e+00> : vector<32xf32>
    %45 = vector.multi_reduction <add>, %44, %cst_30 [1] : vector<32x256xf32> to vector<32xf32>
    %46 = vector.shape_cast %45 : vector<32xf32> to vector<32x1xf32>
    %cst_31 = arith.constant 3.906250e-03 : f32
    %47 = vector.broadcast %cst_31 : f32 to vector<32x1xf32>
    %48 = arith.mulf %46, %47 : vector<32x1xf32>
    %c0_32 = arith.constant 0 : index
    %c0_33 = arith.constant 0 : index
    %49 = vector.load %arg3[%c0_32, %c0_33] : memref<32x8xf32, #tpu.memory_space<vmem>>, vector<32x8xf32>
    %50 = vector.broadcast %48 : vector<32x1xf32> to vector<32x8xf32>
    %51 = arith.mulf %49, %50 : vector<32x8xf32>
    %cst_34 = arith.constant dense<0.000000e+00> : vector<8xf32>
    %52 = vector.multi_reduction <add>, %51, %cst_34 [0] : vector<32x8xf32> to vector<8xf32>
    %53 = vector.shape_cast %52 : vector<8xf32> to vector<1x8xf32>
    %c0_35 = arith.constant 0 : index
    %c0_36 = arith.constant 0 : index
    %54 = vector.load %arg4[%c0_35, %c0_36] : memref<1x8xf32, #tpu.memory_space<vmem>>, vector<1x8xf32>
    %55 = arith.addf %53, %54 : vector<1x8xf32>
    %cst_37 = arith.constant 0.000000e+00 : f32
    %56 = vector.broadcast %cst_37 : f32 to vector<1x8xf32>
    %57 = arith.maximumf %55, %56 : vector<1x8xf32>
    %c0_38 = arith.constant 0 : index
    %c0_39 = arith.constant 0 : index
    %58 = vector.load %arg5[%c0_38, %c0_39] : memref<32x8xf32, #tpu.memory_space<vmem>>, vector<32x8xf32>
    %59 = vector.broadcast %57 : vector<1x8xf32> to vector<32x8xf32>
    %60 = arith.mulf %58, %59 : vector<32x8xf32>
    %cst_40 = arith.constant dense<0.000000e+00> : vector<32xf32>
    %61 = vector.multi_reduction <add>, %60, %cst_40 [1] : vector<32x8xf32> to vector<32xf32>
    %62 = vector.shape_cast %61 : vector<32xf32> to vector<32x1xf32>
    %c0_41 = arith.constant 0 : index
    %c0_42 = arith.constant 0 : index
    %63 = vector.load %arg6[%c0_41, %c0_42] : memref<32x1xf32, #tpu.memory_space<vmem>>, vector<32x1xf32>
    %64 = arith.addf %62, %63 : vector<32x1xf32>
    %cst_43 = arith.constant 0.000000e+00 : f32
    %65 = vector.broadcast %cst_43 : f32 to vector<32x1xf32>
    %66 = arith.subf %65, %64 : vector<32x1xf32>
    %67 = math.exp %66 : vector<32x1xf32>
    %cst_44 = arith.constant 1.000000e+00 : f32
    %68 = vector.broadcast %cst_44 : f32 to vector<32x1xf32>
    %69 = arith.addf %68, %67 : vector<32x1xf32>
    %70 = tpu.reciprocal %69 : vector<32x1xf32> -> vector<32x1xf32>
    %cst_45 = arith.constant 1.000000e+00 : f32
    %71 = vector.broadcast %cst_45 : f32 to vector<32x1xf32>
    %72 = arith.addf %71, %70 : vector<32x1xf32>
    %73 = vector.broadcast %72 : vector<32x1xf32> to vector<32x256xf32>
    %74 = arith.mulf %44, %73 : vector<32x256xf32>
    %c1_46 = arith.constant 1 : index
    %c0_47 = arith.constant 0 : index
    %c0_48 = arith.constant 0 : index
    %75 = vector.load %arg7[%c1_46, %c0_47, %c0_48] : memref<2x32x256xf32, #tpu.memory_space<vmem>>, vector<1x32x256xf32>
    %76 = vector.shape_cast %75 : vector<1x32x256xf32> to vector<32x256xf32>
    %77 = vector.shape_cast %74 : vector<32x256xf32> to vector<1x32x256xf32>
    tpu.vector_store %arg7[%c1_46, %c0_47, %c0_48], %77 {strides = array<i32>} : memref<2x32x256xf32, #tpu.memory_space<vmem>>, vector<1x32x256xf32>,
    return
  }
  func.func @transform_0(%arg0: i32) -> (i32, i32, i32) {
    %c0_i32 = arith.constant 0 : i32
    %c0_i32_0 = arith.constant 0 : i32
    %c0_i32_1 = arith.constant 0 : i32
    return %arg0, %c0_i32, %c0_i32_0 : i32, i32, i32
  }
  func.func @transform_1(%arg0: i32) -> (i32, i32) {
    %c0_i32 = arith.constant 0 : i32
    %c0_i32_0 = arith.constant 0 : i32
    %c0_i32_1 = arith.constant 0 : i32
    return %c0_i32, %c0_i32_0 : i32, i32
  }
  func.func @transform_2(%arg0: i32) -> (i32, i32) {
    %c0_i32 = arith.constant 0 : i32
    %c0_i32_0 = arith.constant 0 : i32
    %c0_i32_1 = arith.constant 0 : i32
    return %c0_i32, %c0_i32_0 : i32, i32
  }
  func.func @transform_3(%arg0: i32) -> (i32, i32) {
    %c0_i32 = arith.constant 0 : i32
    %c0_i32_0 = arith.constant 0 : i32
    %c0_i32_1 = arith.constant 0 : i32
    return %c0_i32, %c0_i32_0 : i32, i32
  }
  func.func @transform_4(%arg0: i32) -> (i32, i32) {
    %c0_i32 = arith.constant 0 : i32
    %c0_i32_0 = arith.constant 0 : i32
    %c0_i32_1 = arith.constant 0 : i32
    return %c0_i32, %c0_i32_0 : i32, i32
  }
  func.func @transform_5(%arg0: i32) -> (i32, i32) {
    %c0_i32 = arith.constant 0 : i32
    %c0_i32_0 = arith.constant 0 : i32
    %c0_i32_1 = arith.constant 0 : i32
    return %c0_i32, %c0_i32_0 : i32, i32
  }
  func.func @transform_6(%arg0: i32) -> (i32, i32, i32) {
    %c0_i32 = arith.constant 0 : i32
    %c0_i32_0 = arith.constant 0 : i32
    %c0_i32_1 = arith.constant 0 : i32
    return %arg0, %c0_i32, %c0_i32_0 : i32, i32, i32
  }
}

</mosaic_0001>

<bundles_post_ra>
// kernel: tpu_custom_call.1
= control target key start
LH: loop header
LB: loop body
LE: loop exit
PB: predicated region body
PF: predicated region fallthrough
CT: control target
= control target key end

     0   :  { %vm43_vm0 = vcmask 1044480   ;;  %vm30_vm1 = vcmask 39936   ;;  %s1009_s0 = inlined_call_operand.vmem [shape: f32[2,5,256], index: 0, kind: input, shape index: {}]   ;;  %s1010_s1 = inlined_call_operand.vmem [shape: f32[32,5], index: 1, kind: input, shape index: {}]   ;;  %s1011_s2 = inlined_call_operand.vmem [shape: f32[32,8], index: 2, kind: input, shape index: {}]   ;;  %s1012_s3 = inlined_call_operand.vmem [shape: f32[1,8], index: 3, kind: input, shape index: {}]   ;;  %s1013_s4 = inlined_call_operand.vmem [shape: f32[32,8], index: 4, kind: input, shape index: {}]   ;;  %s1014_s5 = inlined_call_operand.vmem [shape: f32[32,1], index: 5, kind: input, shape index: {}]   ;;  %s1015_s6 = inlined_call_operand.hbm [shape: f32[2,32,256], index: 6, kind: output, shape index: {}]  }
   0x1   :  { %v28_v0 = vld [vmem:[%s1009_s0] sm:$0x1f]  ;;  %v29_v1 = vld [vmem:[%s1009_s0 + $0x8] sm:$0x1f]  ;;  %v599_v3 = vld [vmem:[%s1009_s0 + $0x10] sm:$0x1f] }
   0x2   :  { %v24_v2 = vld [vmem:[%s1010_s1] sm:$0xff]  ;;  %589 = vmatpush.msk.msra.mxu0 %vm43_vm0, %v28_v0  ;;  %594 = vmatpush.msk.msra.mxu1 %vm43_vm0, %v29_v1  ;;  %v600_v4 = vld [vmem:[%s1009_s0 + $0x18] sm:$0x1f] }
   0x3   :  { %601 = vmatpush.msk.msra.mxu2 %vm43_vm0, %v599_v3  ;;  %606 = vmatpush.msk.msra.mxu3 %vm43_vm0, %v600_v4 }
   0x4   :  { %11 = vsyncpa [#allocation3], 0  ;;  %590 = vmatmul.msk.f32.vlgmr.msra.gmra.mxu0 %vm30_vm1, %v24_v2  ;;  %595 = vmatmul.msk.f32.vlgmr.msra.gmra.mxu1 %vm30_vm1, %v24_v2  ;;  %v25_v5 = vld [vmem:[%s1010_s1 + $0x8] sm:$0xff]  ;;  %v26_v6 = vld [vmem:[%s1010_s1 + $0x10] sm:$0xff]  ;;  %vm140_vm2 = vcmask 64512   ;;  %s577_s13 = sshll.u32 %s1015_s6, 4  ;;  %s578_s13 = int_to_ptr.hbm [resolvable:$true] %s577_s13 }
   0x5   :  { %602 = vmatmul.msk.f32.vlgmr.msra.gmra.mxu2 %vm30_vm1, %v24_v2  ;;  %607 = vmatmul.msk.f32.vlgmr.msra.gmra.mxu3 %vm30_vm1, %v24_v2  ;;  %v27_v7 = vld [vmem:[%s1010_s1 + $0x18] sm:$0xff]  ;;  %v133_v52 = vld [vmem:[%s1011_s2 + $0x8] sm:$0xff]  ;;  %v132_v56 = vld [vmem:[%s1011_s2] sm:$0xff]  ;;  %s678_s14 = smov 256   ;;  %s679_s15 = smov 16  }
   0x6   :  { %v134_v57 = vld [vmem:[%s1011_s2 + $0x10] sm:$0xff]  ;;  %v135_v2 = vld [vmem:[%s1011_s2 + $0x18] sm:$0xff] }
   0xc   :  { %591 = vmatmul.msk.f32.gmra.mxu0 %vm30_vm1, %v25_v5  ;;  %596 = vmatmul.msk.f32.gmra.mxu1 %vm30_vm1, %v25_v5 }
   0xd   :  { %603 = vmatmul.msk.f32.gmra.mxu2 %vm30_vm1, %v25_v5  ;;  %608 = vmatmul.msk.f32.gmra.mxu3 %vm30_vm1, %v25_v5 }
  0x14   :  { %592 = vmatmul.msk.f32.gmra.mxu0 %vm30_vm1, %v26_v6  ;;  %597 = vmatmul.msk.f32.gmra.mxu1 %vm30_vm1, %v26_v6 }
  0x15   :  { %604 = vmatmul.msk.f32.gmra.mxu2 %vm30_vm1, %v26_v6  ;;  %609 = vmatmul.msk.f32.gmra.mxu3 %vm30_vm1, %v26_v6 }
  0x1c   :  { %593 = vmatmul.msk.f32.gmra.mxu0 %vm30_vm1, %v27_v7  ;;  %598 = vmatmul.msk.f32.gmra.mxu1 %vm30_vm1, %v27_v7 }
  0x1d   :  { %605 = vmatmul.msk.f32.gmra.mxu2 %vm30_vm1, %v27_v7  ;;  %610 = vmatmul.msk.f32.gmra.mxu3 %vm30_vm1, %v27_v7 }
  0x81   :  { %v755_v8 = vpop.f32.mrf.mxu0  ;;  %v757_v9 = vpop.f32.mrf.mxu1 }
  0x82   :  { %v108_v10 = vmax.f32 %v755_v8, 0.0  ;;  %v109_v11 = vmax.f32 %v757_v9, 0.0 }
  0x84   :  { %v116_v12 = vadd.f32 %v109_v11, %v108_v10 }
  0x86   :  { %117 = vadd.xlane.f32.xlu0 %v116_v12 }
  0x88   :  { %v765_v13 = vpop.f32.mrf.mxu2  ;;  %v767_v14 = vpop.f32.mrf.mxu3 }
  0x89   :  { %v381_v15 = vmax.f32 %v765_v13, 0.0  ;;  %v382_v16 = vmax.f32 %v767_v14, 0.0  ;;  %v771_v17 = vpop.f32.mrf.mxu0  ;;  %v773_v18 = vpop.f32.mrf.mxu1 }
  0x8a   :  { %v110_v19 = vmax.f32 %v771_v17, 0.0  ;;  %v111_v20 = vmax.f32 %v773_v18, 0.0 }
  0x8b   :  { %v389_v21 = vadd.f32 %v382_v16, %v381_v15 }
  0x8c   :  { %v119_v22 = vadd.f32 %v111_v20, %v110_v19 }
  0x8d   :  { %390 = vadd.xlane.f32.xlu1 %v389_v21 }
  0x8e   :  { %120 = vadd.xlane.f32.xlu0 %v119_v22 }
  0x90   :  { %v785_v23 = vpop.f32.mrf.mxu2  ;;  %v787_v24 = vpop.f32.mrf.mxu3 }
  0x91   :  { %v383_v25 = vmax.f32 %v785_v23, 0.0  ;;  %v384_v26 = vmax.f32 %v787_v24, 0.0  ;;  %v791_v27 = vpop.f32.mrf.mxu0  ;;  %v793_v28 = vpop.f32.mrf.mxu1 }
  0x92   :  { %v112_v29 = vmax.f32 %v791_v27, 0.0  ;;  %v113_v30 = vmax.f32 %v793_v28, 0.0 }
  0x93   :  { %v392_v31 = vadd.f32 %v384_v26, %v383_v25 }
  0x94   :  { %v122_v32 = vadd.f32 %v113_v30, %v112_v29 }
  0x95   :  { %393 = vadd.xlane.f32.xlu1 %v392_v31 }
  0x96   :  { %123 = vadd.xlane.f32.xlu2 %v122_v32 }
  0x98   :  { %v805_v33 = vpop.f32.mrf.mxu2  ;;  %v807_v34 = vpop.f32.mrf.mxu3 }
  0x99   :  { %v385_v35 = vmax.f32 %v805_v33, 0.0  ;;  %v386_v36 = vmax.f32 %v807_v34, 0.0  ;;  %v811_v37 = vpop.f32.mrf.mxu0  ;;  %v813_v38 = vpop.f32.mrf.mxu1 }
  0x9a   :  { %v114_v39 = vmax.f32 %v811_v37, 0.0  ;;  %v115_v40 = vmax.f32 %v813_v38, 0.0 }
  0x9b   :  { %v395_v41 = vadd.f32 %v386_v36, %v385_v35 }
  0x9c   :  { %v125_v42 = vadd.f32 %v115_v40, %v114_v39 }
  0x9e   :  { %396 = vadd.xlane.f32.xlu2 %v395_v41  ;;  %126 = vadd.xlane.f32.xlu0 %v125_v42 }
  0xa0   :  { %v825_v43 = vpop.f32.mrf.mxu2  ;;  %v827_v44 = vpop.f32.mrf.mxu3 }
  0xa1   :  { %v387_v45 = vmax.f32 %v825_v43, 0.0  ;;  %v388_v46 = vmax.f32 %v827_v44, 0.0 }
  0xa3   :  { %v398_v47 = vadd.f32 %v388_v46, %v387_v45 }
  0xa5   :  { %399 = vadd.xlane.f32.xlu1 %v398_v47 }
  0xf9   :  { %v118_v48 = vpop.xlane.xlu0 %117 }
  0xfa   :  { %v128_v54 = vmul.f32 0.00390625, %v118_v48 }
  0xfc   :  { %v136_v60 = vmul.f32 %v132_v56, %v128_v54 }
  0xfe   :  { %v141_v4 = vsel %vm140_vm2, %v136_v60, 0.0 }
 0x100   :  { %v391_v49 = vpop.xlane.xlu1 %390 }
 0x101   :  { %v121_v50 = vpop.xlane.xlu0 %120  ;;  %v401_v0 = vmul.f32 0.00390625, %v391_v49 }
 0x102   :  { %v129_v51 = vmul.f32 0.00390625, %v121_v50 }
 0x103   :  { %v409_v31 = vmul.f32 %v401_v0, %v132_v56 }
 0x104   :  { %v137_v58 = vmul.f32 %v133_v52, %v129_v51 }
 0x105   :  { %v413_v50 = vsel %vm140_vm2, %v409_v31, 0.0 }
 0x106   :  { %v142_v63 = vsel %vm140_vm2, %v137_v58, 0.0 }
 0x107   :  { %v143_v12 = vadd.f32 %v142_v63, %v141_v4 }
 0x108   :  { %v394_v59 = vpop.xlane.xlu1 %393 }
 0x109   :  { %v124_v53 = vpop.xlane.xlu2 %123  ;;  %v402_v62 = vmul.f32 0.00390625, %v394_v59 }
 0x10a   :  { %v130_v55 = vmul.f32 0.00390625, %v124_v53 }
 0x10b   :  { %v410_v21 = vmul.f32 %v402_v62, %v133_v52 }
 0x10c   :  { %v138_v61 = vmul.f32 %v134_v57, %v130_v55 }
 0x10d   :  { %v414_v47 = vsel %vm140_vm2, %v410_v21, 0.0  ;;  %v158_v21 = vld [vmem:[%s1013_s4 + $0x8] sm:$0xff] }
 0x10e   :  { %v144_v5 = vsel %vm140_vm2, %v138_v61, 0.0  ;;  %v415_v55 = vadd.f32 %v414_v47, %v413_v50 }
 0x10f   :  { %v145_v32 = vadd.f32 %v144_v5, %v143_v12 }
 0x111   :  { %v397_v1 = vpop.xlane.xlu2 %396  ;;  %v127_v3 = vpop.xlane.xlu0 %126 }
 0x112   :  { %v403_v6 = vmul.f32 0.00390625, %v397_v1  ;;  %v131_v7 = vmul.f32 0.00390625, %v127_v3  ;;  %v154_v1 = vld [vmem:[%s1012_s3] sm:$0x1] }
 0x114   :  { %v139_v22 = vmul.f32 %v135_v2, %v131_v7  ;;  %v411_v41 = vmul.f32 %v403_v6, %v134_v57 }
 0x116   :  { %v146_v42 = vsel %vm140_vm2, %v139_v22, 0.0  ;;  %v416_v51 = vsel %vm140_vm2, %v411_v41, 0.0  ;;  %v157_v22 = vld [vmem:[%s1013_s4] sm:$0xff] }
 0x117   :  { %v147_v48 = vadd.f32 %v146_v42, %v145_v32  ;;  %v417_v52 = vadd.f32 %v416_v51, %v415_v55  ;;  %v426_v32 = vld [vmem:[%s1012_s3] sm:$0x1]  ;;  %v160_v55 = vld [vmem:[%s1013_s4 + $0x18] sm:$0xff] }
 0x118   :  { %v400_v49 = vpop.xlane.xlu1 %399 }
 0x119   :  { %v148_v53 = vrot.slane %v147_v48, 4  ;;  %v404_v54 = vmul.f32 0.00390625, %v400_v49 }
 0x11b   :  { %v149_v58 = vadd.f32 %v148_v53, %v147_v48  ;;  %v412_v59 = vmul.f32 %v404_v54, %v135_v2  ;;  %v159_v2 = vld [vmem:[%s1013_s4 + $0x10] sm:$0xff] }
 0x11d   :  { %v150_v60 = vrot.slane %v149_v58, 2  ;;  %v418_v56 = vsel %vm140_vm2, %v412_v59, 0.0 }
 0x11e   :  { %v419_v57 = vadd.f32 %v418_v56, %v417_v52 }
 0x11f   :  { %v151_v61 = vadd.f32 %v150_v60, %v149_v58 }
 0x120   :  { %v420_v62 = vrot.slane %v419_v57, 4 }
 0x121   :  { %v152_v63 = vrot.slane %v151_v61, 1 }
 0x122   :  { %v421_v0 = vadd.f32 %v420_v62, %v419_v57 }
 0x123   :  { %v153_v3 = vadd.f32 %v152_v63, %v151_v61 }
 0x124   :  { %v422_v4 = vrot.slane %v421_v0, 2 }
 0x125   :  { %v155_v5 = vadd.f32 %v154_v1, %v153_v3  ;;  %v180_v3 = vld [vmem:[%s1014_s5 + $0x10] sm:$0xff] }
 0x126   :  { %v423_v6 = vadd.f32 %v422_v4, %v421_v0  ;;  %v179_v4 = vld [vmem:[%s1014_s5 + $0x8] sm:$0xff] }
 0x127   :  { %v156_v7 = vmax.f32 %v155_v5, 0.0  ;;  %v178_v5 = vld [vmem:[%s1014_s5] sm:$0xff] }
 0x128   :  { %v424_v12 = vrot.slane %v423_v6, 1 }
 0x129   :  { %v161_v31 = vperm.slane %v156_v7, 0 }
 0x12a   :  { %v425_v41 = vadd.f32 %v424_v12, %v423_v6 }
 0x12b   :  { %v164_v42 = vmul.f32 %v161_v31, %v159_v2  ;;  %v163_v47 = vmul.f32 %v161_v31, %v158_v21  ;;  %v162_v48 = vmul.f32 %v161_v31, %v157_v22  ;;  %v165_v60 = vmul.f32 %v161_v31, %v160_v55 }
 0x12c   :  { %v427_v49 = vadd.f32 %v426_v32, %v425_v41  ;;  %v676_v41 = vmov 0  }
 0x12d   :  { %v172_v50 = vsel %vm140_vm2, %v164_v42, 0.0  ;;  %v169_v51 = vsel %vm140_vm2, %v163_v47, 0.0  ;;  %v166_v53 = vsel %vm140_vm2, %v162_v48, 0.0  ;;  %v175_v61 = vsel %vm140_vm2, %v165_v60, 0.0  ;;  %617 = vset.pattern.permute.xlu0 %v676_v41  ;;  %616 = vset.pattern.permute.xlu2 %v676_v41 }
 0x12e   :  { %173 = vadd.xlane.f32.xlu1 %v172_v50  ;;  %170 = vadd.xlane.f32.xlu0 %v169_v51  ;;  %v428_v54 = vmax.f32 %v427_v49, 0.0  ;;  %v181_v50 = vld [vmem:[%s1014_s5 + $0x18] sm:$0xff]  ;;  %s677_s5 = smov [#allocation2]  }
 0x12f   :  { %167 = vadd.xlane.f32.xlu2 %v166_v53  ;;  %615 = vset.pattern.permute.xlu1 %v676_v41  ;;  %s575_s11 = sshll.u32 %s677_s5, 4  ;;  %s576_s11 = int_to_ptr.vmem [resolvable:$true] %s575_s11 }
 0x130   :  { %v433_v58 = vperm.slane %v428_v54, 0 }
 0x132   :  { %v435_v59 = vmul.f32 %v433_v58, %v158_v21  ;;  %v434_v52 = vmul.f32 %v433_v58, %v157_v22  ;;  %v437_v62 = vmul.f32 %v433_v58, %v160_v55  ;;  %v436_v63 = vmul.f32 %v433_v58, %v159_v2 }
 0x134   :  { %v441_v56 = vsel %vm140_vm2, %v435_v59, 0.0  ;;  %v438_v57 = vsel %vm140_vm2, %v434_v52, 0.0  ;;  %v447_v0 = vsel %vm140_vm2, %v437_v62, 0.0  ;;  %v444_v1 = vsel %vm140_vm2, %v436_v63, 0.0 }
 0x136   :  { %442 = vadd.xlane.f32.xlu1 %v441_v56  ;;  %439 = vadd.xlane.f32.xlu0 %v438_v57 }
 0x137   :  { %176 = vadd.xlane.f32.xlu2 %v175_v61 }
 0x13e   :  { %448 = vadd.xlane.f32.xlu0 %v447_v0 }
 0x13f   :  { %445 = vadd.xlane.f32.xlu2 %v444_v1 }
 0x1a1   :  { %v174_v6 = vpop.xlane.xlu1 %173  ;;  %v171_v7 = vpop.xlane.xlu0 %170 }
 0x1a2   :  { %v184_v12 = vadd.f32 %v180_v3, %v174_v6  ;;  %v183_v2 = vadd.f32 %v179_v4, %v171_v7  ;;  %v168_v21 = vpop.xlane.xlu2 %167 }
 0x1a3   :  { %v182_v22 = vadd.f32 %v178_v5, %v168_v21 }
 0x1a4   :  { %v188_v31 = vsub.f32 0.0, %v184_v12  ;;  %v187_v32 = vsub.f32 0.0, %v183_v2 }
 0x1a5   :  { %v186_v42 = vsub.f32 0.0, %v182_v22 }
 0x1a6   :  { %v194_v47 = vmul.f32 1.442695, %v188_v31  ;;  %v192_v48 = vmul.f32 1.442695, %v187_v32 }
 0x1a7   :  { %v190_v49 = vmul.f32 1.442695, %v186_v42 }
 0x1a8   :  { %618 = vpow2.f32 %v194_v47 }
 0x1a9   :  { %620 = vpow2.f32 %v192_v48  ;;  %v443_v51 = vpop.xlane.xlu1 %442  ;;  %v440_v53 = vpop.xlane.xlu0 %439 }
 0x1aa   :  { %622 = vpow2.f32 %v190_v49  ;;  %v455_v54 = vadd.f32 %v443_v51, %v179_v4  ;;  %v454_v55 = vadd.f32 %v440_v53, %v178_v5  ;;  %v177_v58 = vpop.xlane.xlu2 %176 }
 0x1ab   :  { %v185_v59 = vadd.f32 %v181_v50, %v177_v58 }
 0x1ac   :  { %v459_v52 = vsub.f32 0.0, %v455_v54  ;;  %v458_v60 = vsub.f32 0.0, %v454_v55 }
 0x1ad   :  { %v189_v56 = vsub.f32 0.0, %v185_v59 }
 0x1ae   :  { %v619_v57 = vpop.eup %618  ;;  %v464_v61 = vmul.f32 1.442695, %v459_v52  ;;  %v462_v6 = vmul.f32 1.442695, %v458_v60 }
 0x1af   :  { %v621_v62 = vpop.eup %620  ;;  %v200_v63 = vadd.f32 1.0, %v619_v57  ;;  %v196_v12 = vmul.f32 1.442695, %v189_v56 }
 0x1b0   :  { %v623_v0 = vpop.eup %622  ;;  %v893_v1 = vadd.f32 1.0, %v621_v62  ;;  %624 = vpow2.f32 %v464_v61 }
 0x1b1   :  { %626 = vrcp.f32 %v200_v63  ;;  %v895_v7 = vadd.f32 1.0, %v623_v0  ;;  %v449_v4 = vpop.xlane.xlu0 %448  ;;  %v239_v32 = vand.u32 2147483647, %v200_v63  ;;  %v241_v41 = vand.u32 2147483648, %v200_v63 }
 0x1b2   :  { %628 = vrcp.f32 %v893_v1  ;;  %v457_v5 = vadd.f32 %v449_v4, %v181_v50  ;;  %v446_v2 = vpop.xlane.xlu2 %445  ;;  %vm235_vm3 = vweird.f32 %v200_v63  ;;  %vm221_vm4 = vweird.f32 %v893_v1 }
 0x1b3   :  { %630 = vrcp.f32 %v895_v7  ;;  %v456_v21 = vadd.f32 %v446_v2, %v180_v3  ;;  %vm902_vm5 = vcmp.eq.f32.partialorder %v239_v32, 8.507059e+37  ;;  %v242_v55 = vor.u32 1.1754944e-38, %v241_v41 }
 0x1b4   :  { %632 = vpow2.f32 %v462_v6  ;;  %v461_v22 = vsub.f32 0.0, %v457_v5  ;;  %v225_v59 = vand.u32 2147483647, %v893_v1  ;;  %v227_v56 = vand.u32 2147483648, %v893_v1 }
 0x1b5   :  { %634 = vpow2.f32 %v196_v12  ;;  %v460_v31 = vsub.f32 0.0, %v456_v21  ;;  %v213_v6 = vand.u32 2147483648, %v895_v7  ;;  %v211_v21 = vand.u32 2147483647, %v895_v7 }
 0x1b6   :  { %v625_v42 = vpop.eup %624  ;;  %v468_v47 = vmul.f32 1.442695, %v461_v22  ;;  %vm226_vm10 = vcmp.eq.f32.partialorder %v225_v59, 8.507059e+37  ;;  %vm207_vm11 = vweird.f32 %v895_v7 }
 0x1b7   :  { %v627_v48 = vpop.eup %626  ;;  %v899_v49 = vadd.f32 1.0, %v625_v42  ;;  %v466_v51 = vmul.f32 1.442695, %v460_v31  ;;  %vm212_vm14 = vcmp.eq.f32.partialorder %v211_v21, 8.507059e+37 }
 0x1b8   :  { %v629_v53 = vpop.eup %628  ;;  %636 = vpow2.f32 %v468_v47  ;;  %v231_v54 = vmul.f32 %v627_v48, %v200_v63  ;;  %vm236_vm6 = vweird.f32 %v627_v48 }
 0x1b9   :  { %v631_v50 = vpop.eup %630  ;;  %v217_v58 = vmul.f32 %v629_v53, %v893_v1  ;;  %638 = vpow2.f32 %v466_v51  ;;  %vm222_vm7 = vweird.f32 %v629_v53  ;;  %vm237_vm9 = vmor %vm235_vm3, %vm236_vm6 }
 0x1ba   :  { %v633_v52 = vpop.eup %632  ;;  %v232_v60 = vsub.f32 1.0, %v231_v54  ;;  %v203_v57 = vmul.f32 %v631_v50, %v895_v7  ;;  %640 = vrcp.f32 %v899_v49  ;;  %vm208_vm8 = vweird.f32 %v631_v50  ;;  %vm223_vm12 = vmor %vm221_vm4, %vm222_vm7 }
 0x1bb   :  { %v635_v61 = vpop.eup %634  ;;  %v911_v62 = vadd.f32 1.0, %v633_v52  ;;  %v218_v0 = vsub.f32 1.0, %v217_v58  ;;  %v228_v54 = vor.u32 1.1754944e-38, %v227_v56  ;;  %v214_v52 = vor.u32 1.1754944e-38, %v213_v6  ;;  %vm209_vm13 = vmor %vm207_vm11, %vm208_vm8 }
 0x1bc   :  { %v914_v12 = vadd.f32 1.0, %v635_v61  ;;  %v233_v4 = vmul.f32 %v627_v48, %v232_v60  ;;  %v204_v5 = vsub.f32 1.0, %v203_v57 }
 0x1bd   :  { %642 = vrcp.f32 %v911_v62  ;;  %v219_v2 = vmul.f32 %v629_v53, %v218_v0  ;;  %v483_v3 = vand.u32 2147483647, %v911_v62  ;;  %vm479_vm15 = vweird.f32 %v911_v62 }
 0x1be   :  { %v637_v22 = vpop.eup %636  ;;  %644 = vrcp.f32 %v914_v12  ;;  %v234_v31 = vadd.f32 %v627_v48, %v233_v4  ;;  %v205_v32 = vmul.f32 %v631_v50, %v204_v5  ;;  %vm249_vm3 = vweird.f32 %v914_v12 }
 0x1bf   :  { %v919_v41 = vadd.f32 1.0, %v637_v22  ;;  %v220_v42 = vadd.f32 %v629_v53, %v219_v2  ;;  %v639_v47 = vpop.eup %638  ;;  %v485_v2 = vand.u32 2147483648, %v911_v62  ;;  %vm946_vm1 = vcmp.eq.f32.partialorder %v483_v3, 8.507059e+37 }
 0x1c0   :  { %v238_v51 = vsel %vm237_vm9, %v627_v48, %v234_v31  ;;  %v206_v58 = vadd.f32 %v631_v50, %v205_v32  ;;  %v925_v60 = vpop.eup %640  ;;  %v928_v57 = vadd.f32 1.0, %v639_v47  ;;  %v253_v32 = vand.u32 2147483647, %v914_v12 }
 0x1c1   :  { %646 = vrcp.f32 %v919_v41  ;;  %v243_v63 = vsel %vm902_vm5, %v242_v55, %v238_v51  ;;  %v224_v59 = vsel %vm223_vm12, %v629_v53, %v220_v42  ;;  %v489_v53 = vmul.f32 %v925_v60, %v899_v49 }
 0x1c2   :  { %v260_v7 = vadd.f32 1.0, %v243_v63  ;;  %v229_v48 = vsel %vm226_vm10, %v228_v54, %v224_v59  ;;  %v210_v61 = vsel %vm209_vm13, %v631_v50, %v206_v58  ;;  %648 = vrcp.f32 %v928_v57 }
 0x1c3   :  { %v643_v1 = vpop.eup %642  ;;  %v259_v56 = vadd.f32 1.0, %v229_v48  ;;  %v215_v0 = vsel %vm212_vm14, %v214_v52, %v210_v61  ;;  %v490_v21 = vsub.f32 1.0, %v489_v53  ;;  %v255_v42 = vand.u32 2147483648, %v914_v12 }
 0x1c4   :  { %v645_v6 = vpop.eup %644  ;;  %274 = vperm.xlu0 %617, %v260_v7   ;;  %v258_v4 = vadd.f32 1.0, %v215_v0  ;;  %v475_v5 = vmul.f32 %v643_v1, %v911_v62  ;;  %v499_v47 = vand.u32 2147483648, %v899_v49  ;;  %vm480_vm0 = vweird.f32 %v643_v1 }
 0x1c5   :  { %269 = vperm.xlu2 %616, %v259_v56   ;;  %v245_v55 = vmul.f32 %v645_v6, %v914_v12  ;;  %vm250_vm2 = vweird.f32 %v645_v6  ;;  %v491_v63 = vmul.f32 %v925_v60, %v490_v21  ;;  %v486_v48 = vor.u32 1.1754944e-38, %v485_v2  ;;  %vm481_vm4 = vmor %vm479_vm15, %vm480_vm0 }
 0x1c6   :  { %264 = vperm.xlu1 %615, %v258_v4   ;;  %v476_v50 = vsub.f32 1.0, %v475_v5  ;;  %vm254_vm5 = vcmp.eq.f32.partialorder %v253_v32, 8.507059e+37  ;;  %v256_v56 = vor.u32 1.1754944e-38, %v255_v42  ;;  %vm494_vm6 = vweird.f32 %v925_v60  ;;  %vm251_vm7 = vmor %vm249_vm3, %vm250_vm2 }
 0x1c7   :  { %v940_v22 = vpop.eup %646  ;;  %v246_v31 = vsub.f32 1.0, %v245_v55  ;;  %v511_v5 = vand.u32 2147483647, %v928_v57  ;;  %v513_v3 = vand.u32 2147483648, %v928_v57  ;;  %v492_v12 = vadd.f32 %v925_v60, %v491_v63 }
 0x1c8   :  { %v477_v51 = vmul.f32 %v643_v1, %v476_v50  ;;  %v649_v58 = vpop.eup %648  ;;  %v517_v59 = vmul.f32 %v940_v22, %v919_v41  ;;  %vm493_vm9 = vweird.f32 %v899_v49  ;;  %vm507_vm11 = vweird.f32 %v928_v57 }
 0x1c9   :  { %v247_v52 = vmul.f32 %v645_v6, %v246_v31  ;;  %v503_v61 = vmul.f32 %v649_v58, %v928_v57  ;;  %vm508_vm8 = vweird.f32 %v649_v58  ;;  %vm495_vm10 = vmor %vm493_vm9, %vm494_vm6  ;;  %vm512_vm13 = vcmp.eq.f32.partialorder %v511_v5, 8.507059e+37 }
 0x1ca   :  { %v478_v7 = vadd.f32 %v643_v1, %v477_v51  ;;  %v518_v50 = vsub.f32 1.0, %v517_v59  ;;  %vm509_vm12 = vmor %vm507_vm11, %vm508_vm8  ;;  %v514_v51 = vor.u32 1.1754944e-38, %v513_v3  ;;  %vm522_vm15 = vweird.f32 %v940_v22 }
 0x1cb   :  { %v248_v62 = vadd.f32 %v645_v6, %v247_v52  ;;  %v504_v4 = vsub.f32 1.0, %v503_v61  ;;  %v500_v52 = vor.u32 1.1754944e-38, %v499_v47  ;;  %v527_v57 = vand.u32 2147483648, %v919_v41 }
 0x1cc   :  { %v482_v0 = vsel %vm481_vm4, %v643_v1, %v478_v7  ;;  %v497_v1 = vand.u32 2147483647, %v899_v49  ;;  %v519_v54 = vmul.f32 %v940_v22, %v518_v50  ;;  %vm521_vm0 = vweird.f32 %v919_v41 }
 0x1cd   :  { %v487_v53 = vsel %vm946_vm1, %v486_v48, %v482_v0  ;;  %v252_v55 = vsel %vm251_vm7, %v645_v6, %v248_v62  ;;  %v505_v31 = vmul.f32 %v649_v58, %v504_v4  ;;  %v496_v6 = vsel %vm495_vm10, %v925_v60, %v492_v12  ;;  %vm523_vm1 = vmor %vm521_vm0, %vm522_vm15 }
 0x1ce   :  { %v530_v2 = vadd.f32 1.0, %v487_v53  ;;  %v257_v21 = vsel %vm254_vm5, %v256_v56, %v252_v55  ;;  %vm498_vm14 = vcmp.eq.f32.partialorder %v497_v1, 8.507059e+37  ;;  %v520_v48 = vadd.f32 %v940_v22, %v519_v54 }
 0x1cf   :  { %v261_v32 = vadd.f32 1.0, %v257_v21  ;;  %v506_v42 = vadd.f32 %v649_v58, %v505_v31  ;;  %v501_v49 = vsel %vm498_vm14, %v500_v52, %v496_v6  ;;  %v525_v60 = vand.u32 2147483647, %v919_v41 }
 0x1d0   :  { %536 = vperm.xlu1 %615, %v530_v2   ;;  %v531_v61 = vadd.f32 1.0, %v501_v49  ;;  %v524_v47 = vsel %vm523_vm1, %v940_v22, %v520_v48 }
 0x1d1   :  { %279 = vperm.xlu2 %616, %v261_v32   ;;  %v510_v63 = vsel %vm509_vm12, %v649_v58, %v506_v42  ;;  %v528_v58 = vor.u32 1.1754944e-38, %v527_v57  ;;  %vm526_vm2 = vcmp.eq.f32.partialorder %v525_v60, 8.507059e+37 }
 0x1d2   :  { %v515_v59 = vsel %vm512_vm13, %v514_v51, %v510_v63 }
 0x1d3   :  { %v532_v7 = vadd.f32 1.0, %v515_v59  ;;  %v529_v62 = vsel %vm526_vm2, %v528_v58, %v524_v47 }
 0x1d4   :  { %v533_v56 = vadd.f32 1.0, %v529_v62 }
 0x1d8   :  { %546 = vperm.xlu1 %615, %v532_v7  }
 0x1d9   :  { %541 = vperm.xlu2 %616, %v531_v61  }
 0x1e1   :  { %551 = vperm.xlu2 %616, %v533_v56  }
 0x21f   :  { %v270_v0 = vpop.permute.xlu2 %269 }
 0x220   :  { %v284_v4 = vmul.f32 %v270_v0, %v110_v19  ;;  %v285_v5 = vmul.f32 %v270_v0, %v111_v20 }
 0x222   :  { %292 = vst [vmem:[#allocation2 + $0x10] sm:$0xff] %v284_v4 }
 0x223   :  { %293 = vst [vmem:[#allocation2 + $0x18] sm:$0xff] %v285_v5 }
 0x22b   :  { %v280_v41 = vpop.permute.xlu2 %279 }
 0x22c   :  { %v288_v3 = vmul.f32 %v280_v41, %v114_v39  ;;  %v289_v22 = vmul.f32 %v280_v41, %v115_v40 }
 0x22e   :  { %296 = vst [vmem:[#allocation2 + $0x30] sm:$0xff] %v288_v3 }
 0x22f   :  { %297 = vst [vmem:[#allocation2 + $0x38] sm:$0xff] %v289_v22 }
 0x233   :  { %v542_v53 = vpop.permute.xlu2 %541 }
 0x234   :  { %v556_v55 = vmul.f32 %v542_v53, %v383_v25  ;;  %v557_v17 = vmul.f32 %v542_v53, %v384_v26 }
 0x236   :  { %565 = vst [vmem:[#allocation2 + $0x50] sm:$0xff] %v556_v55  ;;  %v275_v18 = vpop.permute.xlu0 %274 }
 0x237   :  { %566 = vst [vmem:[#allocation2 + $0x58] sm:$0xff] %v557_v17  ;;  %v286_v19 = vmul.f32 %v275_v18, %v112_v29  ;;  %v287_v20 = vmul.f32 %v275_v18, %v113_v30 }
 0x238   :  { %v265_v37 = vpop.permute.xlu1 %264 }
 0x239   :  { %294 = vst [vmem:[#allocation2 + $0x20] sm:$0xff] %v286_v19  ;;  %v282_v38 = vmul.f32 %v265_v37, %v108_v10  ;;  %v283_v23 = vmul.f32 %v265_v37, %v109_v11 }
 0x23a   :  { %295 = vst [vmem:[#allocation2 + $0x28] sm:$0xff] %v287_v20 }
 0x23b   :  { %290 = vst [vmem:[#allocation2] sm:$0xff] %v282_v38  ;;  %v552_v24 = vpop.permute.xlu2 %551 }
 0x23c   :  { %291 = vst [vmem:[#allocation2 + $0x8] sm:$0xff] %v283_v23  ;;  %v560_v25 = vmul.f32 %v552_v24, %v387_v45  ;;  %v561_v26 = vmul.f32 %v552_v24, %v388_v46 }
 0x23e   :  { %569 = vst [vmem:[#allocation2 + $0x70] sm:$0xff] %v560_v25 }
 0x23f   :  { %570 = vst [vmem:[#allocation2 + $0x78] sm:$0xff] %v561_v26 }
 0x242   :  { %v537_v27 = vpop.permute.xlu1 %536 }
 0x243   :  { %v554_v8 = vmul.f32 %v537_v27, %v381_v15  ;;  %v555_v9 = vmul.f32 %v537_v27, %v382_v16 }
 0x245   :  { %563 = vst [vmem:[#allocation2 + $0x40] sm:$0xff] %v554_v8 }
 0x246   :  { %564 = vst [vmem:[#allocation2 + $0x48] sm:$0xff] %v555_v9 }
 0x24a   :  { %v547_v10 = vpop.permute.xlu1 %546 }
 0x24b   :  { %v558_v11 = vmul.f32 %v547_v10, %v385_v35  ;;  %v559_v28 = vmul.f32 %v547_v10, %v386_v36 }
 0x24d   :  { %567 = vst [vmem:[#allocation2 + $0x60] sm:$0xff] %v558_v11 }
 0x24e   :  { %568 = vst [vmem:[#allocation2 + $0x68] sm:$0xff] %v559_v28 }
 0x24f   :  { %583 = dma.vmem_to_hbm [thread:$0]  %s576_s11, 2048, %s578_s13, [#allocation3], %s678_s14, %s678_s14, %s679_s15  }
 0x250   :  { %674 = dma.done.wait [#allocation3], 2048  }
 0x251   :  { %675 = vsyncadd [#allocation3], 4294965248 }
 0x252   :  { %588 = vsyncpa [#allocation3], 1 }

</bundles_post_ra>
